<compile_context>
chip_gen: v6e
topology: v6e:2x2x1
jax: 0.10.0
libtpu: 0.0.40
codegen_flags: <defaults>
</compile_context>

<pallas_src>
import functools

import jax
import jax.numpy as jnp
from jax.experimental import pallas as pl
from jax.experimental.pallas import tpu as pltpu


def _decoder_kernel(z_ref, w1_ref, b1_ref, w2_ref, b2_ref, w3_ref, b3_ref,
                    out_ref, *, use_bf16):
    mm_dtype = jnp.bfloat16 if use_bf16 else z_ref.dtype

    # ---- linear1 + ReLU (MXU matmul, f32 accumulate) ----
    h1 = jnp.dot(z_ref[...].astype(mm_dtype), w1_ref[...].astype(mm_dtype),
                 preferred_element_type=jnp.float32)
    h1 = jnp.maximum(h1 + b1_ref[...], 0.0)     # b1 is [1, H1] -> broadcasts

    # ---- linear2 + ReLU ----
    h2 = jnp.dot(h1.astype(mm_dtype), w2_ref[...].astype(mm_dtype),
                 preferred_element_type=jnp.float32)
    h2 = jnp.maximum(h2 + b2_ref[...], 0.0)

    # ---- linear3 + Sigmoid ----
    h3 = jnp.dot(h2.astype(mm_dtype), w3_ref[...].astype(mm_dtype),
                 preferred_element_type=jnp.float32)
    h3 = h3 + b3_ref[...]
    # sigmoid(x) == 0.5 * tanh(0.5 * x) + 0.5 : tanh runs on the EUP slot,
    # avoiding a full-precision VALU divide and exp overflow for large |x|.
    out_ref[...] = (0.5 * jnp.tanh(0.5 * h3) + 0.5).astype(out_ref.dtype)


@functools.partial(jax.jit, static_argnames=("block_batch", "use_bf16"))
def decoder_forward(z, w1, b1, w2, b2, w3, b3, *, block_batch=256,
                    use_bf16=False):
    """Fused Decoder forward.  z: [B, latent]  ->  [B, out_size]."""
    B, latent = z.shape
    h1_dim = w1.shape[1]
    h2_dim = w2.shape[1]
    out_size = w3.shape[1]
    itemsize = z.dtype.itemsize

    # Batch tiling: single full block for small B, 256-row tiles otherwise
    # (multiple of 8 sublanes; also a multiple of 16 so bf16 packing is clean).
    tb = B if B <= block_batch else block_batch
    grid_b = pl.cdiv(B, tb)
    b_pad = grid_b * tb
    if b_pad != B:
        z = jnp.pad(z, ((0, b_pad - B), (0, 0)))

    # Explicit VMEM budget (weights resident + double-buffered z/out tiles +
    # in-flight activations), with headroom; clamp to v7x's 64 MiB physical.
    weight_bytes = sum(int(a.size) * a.dtype.itemsize
                       for a in (w1, b1, w2, b2, w3, b3))
    act_bytes = tb * (latent + h1_dim + h2_dim + 2 * out_size) * 4
    vmem_limit = min(64 * 1024 * 1024,
                     max(8 * 1024 * 1024, 4 * (weight_bytes + 2 * act_bytes)))

    cost = pl.CostEstimate(
        flops=2 * b_pad * (latent * h1_dim + h1_dim * h2_dim
                           + h2_dim * out_size),
        transcendentals=b_pad * out_size,                 # one tanh per output
        bytes_accessed=int(b_pad * latent * itemsize + weight_bytes
                           + b_pad * out_size * itemsize),
    )

    out = pl.pallas_call(
        functools.partial(_decoder_kernel, use_bf16=use_bf16),
        out_shape=jax.ShapeDtypeStruct((b_pad, out_size), z.dtype),
        grid=(grid_b,),
        in_specs=[
            pl.BlockSpec((tb, latent), lambda i: (i, 0)),   # z: batch-tiled
            pl.BlockSpec(w1.shape, lambda i: (0, 0)),       # weights resident
            pl.BlockSpec(b1.shape, lambda i: (0, 0)),
            pl.BlockSpec(w2.shape, lambda i: (0, 0)),
            pl.BlockSpec(b2.shape, lambda i: (0, 0)),
            pl.BlockSpec(w3.shape, lambda i: (0, 0)),
            pl.BlockSpec(b3.shape, lambda i: (0, 0)),
        ],
        out_specs=pl.BlockSpec((tb, out_size), lambda i: (i, 0)),
        compiler_params=pltpu.CompilerParams(
            dimension_semantics=("parallel",),   # v7x: shard batch across TCs
            vmem_limit_bytes=int(vmem_limit)),
        cost_estimate=cost,
    )(z, w1, b1, w2, b2, w3, b3)

    return out[:B] if b_pad != B else out


def init_decoder_params(key, latent_size, out_size, dtype=jnp.float32):
    """Deterministic synthetic init mirroring nn.Linear shapes.

    nn.Linear(in, out) has weight (out, in), bias (out,). We store the
    transposed weight (in, out) and bias reshaped to (1, out) for the kernel.
    """
    h1 = out_size // 4
    h2 = out_size // 2
    dims = [(latent_size, h1), (h1, h2), (h2, out_size)]
    params = []
    for (fan_in, fan_out) in dims:
        key, kw, kb = jax.random.split(key, 3)
        bound = 1.0 / (fan_in ** 0.5)  # matches PyTorch default uniform bound
        w = jax.random.uniform(kw, (fan_in, fan_out), dtype, -bound, bound)
        b = jax.random.uniform(kb, (1, fan_out), dtype, -bound, bound)
        params.extend([w, b])
    return tuple(params)


def _reference_forward(z, w1, b1, w2, b2, w3, b3):
    h = jax.nn.relu(z @ w1 + b1)
    h = jax.nn.relu(h @ w2 + b2)
    return jax.nn.sigmoid(h @ w3 + b3)


if __name__ == "__main__":
    latent_size = 32
    out_size = 128      # -> hidden dims 32 and 64
    batch = 8

    key = jax.random.PRNGKey(0)
    key, kz, kz2 = jax.random.split(key, 3)
    z = jax.random.normal(kz, (batch, latent_size), dtype=jnp.float32)
    params = init_decoder_params(key, latent_size, out_size)

    # --- f32 MXU path: exact semantics of the PyTorch module ---
    w = jax.block_until_ready(decoder_forward(z, *params))
    w_ref = _reference_forward(z, *params)
    assert w.shape == (batch, out_size)
    assert jnp.allclose(w, w_ref, atol=1e-5, rtol=1e-5), "f32 mismatch vs ref"

    # --- bf16 MXU-operand fast path (v6e/v7x), f32 accumulation ---
    w_bf16 = jax.block_until_ready(decoder_forward(z, *params, use_bf16=True))
    assert jnp.allclose(w_bf16, w_ref, atol=2e-2, rtol=2e-2), "bf16 mismatch"

    # --- batch-tiled path (grid > 1, ragged batch -> padding + slice) ---
    big_b = 300
    z_big = jax.random.normal(kz2, (big_b, latent_size), dtype=jnp.float32)
    w_big = jax.block_until_ready(decoder_forward(z_big, *params))
    w_big_ref = _reference_forward(z_big, *params)
    assert w_big.shape == (big_b, out_size)
    assert jnp.allclose(w_big, w_big_ref, atol=1e-5, rtol=1e-5), "tiled mismatch"

    print("KERNEL_OK")
</pallas_src>

<mosaic_0001>
module attributes {stable_mosaic.version = 11 : i64} {
  func.func @_decoder_kernel(%arg0: i32, %arg1: memref<8x32xf32, #tpu.memory_space<vmem>>, %arg2: memref<32x32xf32, #tpu.memory_space<vmem>>, %arg3: memref<1x32xf32, #tpu.memory_space<vmem>>, %arg4: memref<32x64xf32, #tpu.memory_space<vmem>>, %arg5: memref<1x64xf32, #tpu.memory_space<vmem>>, %arg6: memref<64x128xf32, #tpu.memory_space<vmem>>, %arg7: memref<1x128xf32, #tpu.memory_space<vmem>>, %arg8: memref<8x128xf32, #tpu.memory_space<vmem>>) attributes {dimension_semantics = [#tpu.dimension_semantics<parallel>], iteration_bounds = array<i64: 1>, scalar_prefetch = 0 : i64, scratch_operands = 0 : i64, tpu.core_type = #tpu.core_type<tc>, window_params = [{transform_indices = @transform_0, window_bounds = array<i64: 8, 32>}, {pipeline_mode = #tpu.pipeline_mode<synchronous>, transform_indices = @transform_1, window_bounds = array<i64: 32, 32>}, {pipeline_mode = #tpu.pipeline_mode<synchronous>, transform_indices = @transform_2, window_bounds = array<i64: 1, 32>}, {pipeline_mode = #tpu.pipeline_mode<synchronous>, transform_indices = @transform_3, window_bounds = array<i64: 32, 64>}, {pipeline_mode = #tpu.pipeline_mode<synchronous>, transform_indices = @transform_4, window_bounds = array<i64: 1, 64>}, {pipeline_mode = #tpu.pipeline_mode<synchronous>, transform_indices = @transform_5, window_bounds = array<i64: 64, 128>}, {pipeline_mode = #tpu.pipeline_mode<synchronous>, transform_indices = @transform_6, window_bounds = array<i64: 1, 128>}, {transform_indices = @transform_7, window_bounds = array<i64: 8, 128>}]} {
    %c0 = arith.constant 0 : index
    %c0_0 = arith.constant 0 : index
    %0 = vector.load %arg1[%c0, %c0_0] : memref<8x32xf32, #tpu.memory_space<vmem>>, vector<8x32xf32>
    %c0_1 = arith.constant 0 : index
    %c0_2 = arith.constant 0 : index
    %1 = vector.load %arg2[%c0_1, %c0_2] : memref<32x32xf32, #tpu.memory_space<vmem>>, vector<32x32xf32>
    %cst = arith.constant dense<0.000000e+00> : vector<8x32xf32>
    %2 = tpu.matmul %0, %1, %cst {dimension_numbers = #tpu.dot_dimension_numbers<[1], [0], [0], [1], [0, 0, 1, 1], [], []>} : vector<8x32xf32>, vector<32x32xf32>, vector<8x32xf32> -> vector<8x32xf32>
    %c0_3 = arith.constant 0 : index
    %c0_4 = arith.constant 0 : index
    %3 = vector.load %arg3[%c0_3, %c0_4] : memref<1x32xf32, #tpu.memory_space<vmem>>, vector<1x32xf32>
    %4 = vector.broadcast %3 : vector<1x32xf32> to vector<8x32xf32>
    %5 = arith.addf %2, %4 : vector<8x32xf32>
    %cst_5 = arith.constant 0.000000e+00 : f32
    %6 = vector.broadcast %cst_5 : f32 to vector<8x32xf32>
    %7 = arith.maximumf %5, %6 : vector<8x32xf32>
    %c0_6 = arith.constant 0 : index
    %c0_7 = arith.constant 0 : index
    %8 = vector.load %arg4[%c0_6, %c0_7] : memref<32x64xf32, #tpu.memory_space<vmem>>, vector<32x64xf32>
    %cst_8 = arith.constant dense<0.000000e+00> : vector<8x64xf32>
    %9 = tpu.matmul %7, %8, %cst_8 {dimension_numbers = #tpu.dot_dimension_numbers<[1], [0], [0], [1], [0, 0, 1, 1], [], []>} : vector<8x32xf32>, vector<32x64xf32>, vector<8x64xf32> -> vector<8x64xf32>
    %c0_9 = arith.constant 0 : index
    %c0_10 = arith.constant 0 : index
    %10 = vector.load %arg5[%c0_9, %c0_10] : memref<1x64xf32, #tpu.memory_space<vmem>>, vector<1x64xf32>
    %11 = vector.broadcast %10 : vector<1x64xf32> to vector<8x64xf32>
    %12 = arith.addf %9, %11 : vector<8x64xf32>
    %cst_11 = arith.constant 0.000000e+00 : f32
    %13 = vector.broadcast %cst_11 : f32 to vector<8x64xf32>
    %14 = arith.maximumf %12, %13 : vector<8x64xf32>
    %c0_12 = arith.constant 0 : index
    %c0_13 = arith.constant 0 : index
    %15 = vector.load %arg6[%c0_12, %c0_13] : memref<64x128xf32, #tpu.memory_space<vmem>>, vector<64x128xf32>
    %cst_14 = arith.constant dense<0.000000e+00> : vector<8x128xf32>
    %16 = tpu.matmul %14, %15, %cst_14 {dimension_numbers = #tpu.dot_dimension_numbers<[1], [0], [0], [1], [0, 0, 1, 1], [], []>} : vector<8x64xf32>, vector<64x128xf32>, vector<8x128xf32> -> vector<8x128xf32>
    %c0_15 = arith.constant 0 : index
    %c0_16 = arith.constant 0 : index
    %17 = vector.load %arg7[%c0_15, %c0_16] : memref<1x128xf32, #tpu.memory_space<vmem>>, vector<1x128xf32>
    %18 = vector.broadcast %17 : vector<1x128xf32> to vector<8x128xf32>
    %19 = arith.addf %16, %18 : vector<8x128xf32>
    %cst_17 = arith.constant 5.000000e-01 : f32
    %20 = vector.broadcast %cst_17 : f32 to vector<8x128xf32>
    %21 = arith.mulf %20, %19 : vector<8x128xf32>
    %22 = math.tanh %21 : vector<8x128xf32>
    %cst_18 = arith.constant 5.000000e-01 : f32
    %23 = vector.broadcast %cst_18 : f32 to vector<8x128xf32>
    %24 = arith.mulf %23, %22 : vector<8x128xf32>
    %cst_19 = arith.constant 5.000000e-01 : f32
    %25 = vector.broadcast %cst_19 : f32 to vector<8x128xf32>
    %26 = arith.addf %24, %25 : vector<8x128xf32>
    %c0_20 = arith.constant 0 : index
    %c0_21 = arith.constant 0 : index
    %27 = vector.load %arg8[%c0_20, %c0_21] : memref<8x128xf32, #tpu.memory_space<vmem>>, vector<8x128xf32>
    tpu.vector_store %arg8[%c0_20, %c0_21], %26 {strides = array<i32>} : memref<8x128xf32, #tpu.memory_space<vmem>>, vector<8x128xf32>,
    return
  }
  func.func @transform_0(%arg0: i32) -> (i32, i32) {
    %c0_i32 = arith.constant 0 : i32
    %c0_i32_0 = arith.constant 0 : i32
    return %arg0, %c0_i32 : i32, i32
  }
  func.func @transform_1(%arg0: i32) -> (i32, i32) {
    %c0_i32 = arith.constant 0 : i32
    %c0_i32_0 = arith.constant 0 : i32
    %c0_i32_1 = arith.constant 0 : i32
    return %c0_i32, %c0_i32_0 : i32, i32
  }
  func.func @transform_2(%arg0: i32) -> (i32, i32) {
    %c0_i32 = arith.constant 0 : i32
    %c0_i32_0 = arith.constant 0 : i32
    %c0_i32_1 = arith.constant 0 : i32
    return %c0_i32, %c0_i32_0 : i32, i32
  }
  func.func @transform_3(%arg0: i32) -> (i32, i32) {
    %c0_i32 = arith.constant 0 : i32
    %c0_i32_0 = arith.constant 0 : i32
    %c0_i32_1 = arith.constant 0 : i32
    return %c0_i32, %c0_i32_0 : i32, i32
  }
  func.func @transform_4(%arg0: i32) -> (i32, i32) {
    %c0_i32 = arith.constant 0 : i32
    %c0_i32_0 = arith.constant 0 : i32
    %c0_i32_1 = arith.constant 0 : i32
    return %c0_i32, %c0_i32_0 : i32, i32
  }
  func.func @transform_5(%arg0: i32) -> (i32, i32) {
    %c0_i32 = arith.constant 0 : i32
    %c0_i32_0 = arith.constant 0 : i32
    %c0_i32_1 = arith.constant 0 : i32
    return %c0_i32, %c0_i32_0 : i32, i32
  }
  func.func @transform_6(%arg0: i32) -> (i32, i32) {
    %c0_i32 = arith.constant 0 : i32
    %c0_i32_0 = arith.constant 0 : i32
    %c0_i32_1 = arith.constant 0 : i32
    return %c0_i32, %c0_i32_0 : i32, i32
  }
  func.func @transform_7(%arg0: i32) -> (i32, i32) {
    %c0_i32 = arith.constant 0 : i32
    %c0_i32_0 = arith.constant 0 : i32
    return %arg0, %c0_i32 : i32, i32
  }
}

</mosaic_0001>

<bundles_post_ra>
// kernel: decoder_forward.1
= control target key start
LH: loop header
LB: loop body
LE: loop exit
PB: predicated region body
PF: predicated region fallthrough
CT: control target
= control target key end

     0   :  { %12 = vsyncpa [#allocation3], 0  ;;  %s635_s0 = inlined_call_operand.hbm [shape: f32[8,32], index: 0, kind: input, shape index: {}]   ;;  %s636_s1 = inlined_call_operand.hbm [shape: f32[32,32], index: 1, kind: input, shape index: {}]   ;;  %s637_s2 = inlined_call_operand.vmem [shape: f32[1,32], index: 2, kind: input, shape index: {}]   ;;  %s638_s3 = inlined_call_operand.hbm [shape: f32[32,64], index: 3, kind: input, shape index: {}]   ;;  %s639_s4 = inlined_call_operand.vmem [shape: f32[1,64], index: 4, kind: input, shape index: {}]   ;;  %s640_s5 = inlined_call_operand.hbm [shape: f32[64,128], index: 5, kind: input, shape index: {}]   ;;  %s641_s6 = inlined_call_operand.vmem [shape: f32[1,128], index: 6, kind: input, shape index: {}]   ;;  %s642_s7 = inlined_call_operand.hbm [shape: f32[8,128], index: 7, kind: output, shape index: {}]  }
   0x1   :  { %13 = vsyncpa [#allocation6], 0 }
   0x2   :  { %14 = vsyncpa [#allocation9], 0 }
   0x3   :  { %15 = vsyncpa [#allocation4], 0  ;;  %s548_s24 = smov [#allocation5]  }
   0x4   :  { %s31_s25 = sshll.u32 %s548_s24, 4  ;;  %s32_s25 = int_to_ptr.vmem [resolvable:$true] %s31_s25 }
   0x5   :  { %s448_s26 = scalar_lea.vmem %s32_s25, 512  ;;  %p453_p1 = scmp.lt.s32.totalorder %s32_s25, %s32_s25 }
   0x6   :  { %p449_p0 = scmp.ne.s32.totalorder %s32_s25, %s448_s26  ;;  %p454_p2 = scmp.lt.s32.totalorder %s448_s26, %s448_s26 }
   0x8   :  { %p455_p3 = por %p454_p2, %p453_p1 }
   0xa   :  { %p456_p4 = pnand %p455_p3, %p449_p0 }
   0xc   :  { %459 = shalt.err (!%p456_p4)
}
   0xd   :  { %s549_s27 = smov 128   ;;  %s550_s28 = smov 8  }
   0xe   :  { %37 = dma.hbm_to_vmem [thread:$0]  %s636_s1, 512, %s32_s25, [#allocation6], %s549_s27, %s549_s27, %s550_s28  }
   0xf   :  { %s551_s8 = smov [#allocation2]   ;;  %s552_s10 = smov [#allocation7]  }
  0x10   :  { %s22_s9 = sshll.u32 %s551_s8, 4  ;;  %s45_s11 = sshll.u32 %s552_s10, 4  ;;  %s23_s9 = int_to_ptr.vmem [resolvable:$true] %s22_s9  ;;  %s46_s11 = int_to_ptr.vmem [resolvable:$true] %s45_s11 }
  0x11   :  { %s468_s12 = scalar_lea.vmem %s23_s9, 128  ;;  %p473_p6 = scmp.lt.s32.totalorder %s23_s9, %s23_s9 }
  0x12   :  { %p469_p5 = scmp.ne.s32.totalorder %s23_s9, %s468_s12  ;;  %p474_p7 = scmp.lt.s32.totalorder %s468_s12, %s468_s12 }
  0x14   :  { %p475_p8 = por %p474_p7, %p473_p6 }
  0x16   :  { %p476_p9 = pnand %p475_p8, %p469_p5 }
  0x18   :  { %479 = shalt.err (!%p476_p9)
}
  0x19   :  { %25 = dma.hbm_to_vmem [thread:$0]  %s635_s0, 128, %s23_s9, [#allocation3]  }
  0x1a   :  { %s488_s15 = scalar_lea.vmem %s46_s11, 512  ;;  %p493_p11 = scmp.lt.s32.totalorder %s46_s11, %s46_s11 }
  0x1b   :  { %p489_p10 = scmp.ne.s32.totalorder %s46_s11, %s488_s15  ;;  %p494_p12 = scmp.lt.s32.totalorder %s488_s15, %s488_s15 }
  0x1d   :  { %p495_p13 = por %p494_p12, %p493_p11 }
  0x1f   :  { %p496_p0 = pnand %p495_p13, %p489_p10 }
  0x21   :  { %499 = shalt.err (!%p496_p0)
}
  0x22   :  { %51 = dma.hbm_to_vmem [thread:$0]  %s638_s3, 512, %s46_s11, [#allocation6], %s549_s27, %s549_s27, %s550_s28  }
  0x23   :  { %s553_s17 = smov [#allocation8]  }
  0x24   :  { %s59_s18 = sshll.u32 %s553_s17, 4  ;;  %s60_s18 = int_to_ptr.vmem [resolvable:$true] %s59_s18 }
  0x25   :  { %s508_s19 = scalar_lea.vmem %s60_s18, 1024  ;;  %p513_p2 = scmp.lt.s32.totalorder %s60_s18, %s60_s18 }
  0x26   :  { %p509_p1 = scmp.ne.s32.totalorder %s60_s18, %s508_s19  ;;  %p514_p3 = scmp.lt.s32.totalorder %s508_s19, %s508_s19 }
  0x28   :  { %p515_p4 = por %p514_p3, %p513_p2 }
  0x2a   :  { %p516_p5 = pnand %p515_p4, %p509_p1 }
  0x2c   :  { %519 = shalt.err (!%p516_p5)
}
  0x2d   :  { %65 = dma.hbm_to_vmem [thread:$0]  %s640_s5, 1024, %s60_s18, [#allocation9], %s549_s27, %s549_s27, %s550_s28  }
  0x2e   :  { %540 = dma.done.wait [#allocation3], 128  }
  0x2f   :  { %541 = vsyncadd [#allocation3], 4294967168 }
  0x30   :  { %542 = dma.done.wait [#allocation6], 1024  }
  0x31   :  { %543 = vsyncadd [#allocation6], 4294966272 }
  0x32   :  { %544 = dma.done.wait [#allocation9], 1024  }
  0x33   :  { %545 = vsyncadd [#allocation9], 4294966272  ;;  %v554_v0 = vmov 0.0   ;;  %vm555_vm0 = vmmov 0   ;;  %v84_v1 = vld [vmem:[#allocation5 + $0x18] sm:$0xff]  ;;  %v83_v2 = vld [vmem:[#allocation5 + $0x10] sm:$0xff] }
  0x34   :  { %388 = vmatprep.subr.mxu1 %v554_v0  ;;  %396 = vmatprep.mubr.msk.f32.mxu1 %vm555_vm0, %v554_v0  ;;  %v82_v3 = vld [vmem:[#allocation5 + $0x8] sm:$0xff]  ;;  %v81_v4 = vld [vmem:[#allocation5] sm:$0xff]  ;;  %v80_v5 = vld [vmem:[#allocation2] sm:$0xff]  ;;  %vm92_vm1 = vcmask 261120   ;;  %vm267_vm2 = vcmask 523264   ;;  %s556_s24 = smov [#allocation10]  }
  0x35   :  { %410 = vmatprep.subr.mxu0 %v554_v0  ;;  %426 = vmatprep.mubr.msk.f32.mxu0 %vm555_vm0, %v554_v0  ;;  %v170_v6 = vld [vmem:[#allocation7 + $0x18] sm:$0xff]  ;;  %v169_v7 = vld [vmem:[#allocation7 + $0x10] sm:$0xff]  ;;  %v168_v8 = vld [vmem:[#allocation7 + $0x8] sm:$0xff]  ;;  %s352_s25 = sshll.u32 %s556_s24, 4  ;;  %s353_s25 = int_to_ptr.vmem [resolvable:$true] %s352_s25 }
  0x36   :  { %389 = vmatpush3.msra.mxu1 %v84_v1  ;;  %v167_v9 = vld [vmem:[#allocation7] sm:$0xff]  ;;  %v259_v10 = vld [vmem:[#allocation8 + $0x38] sm:$0xff]  ;;  %v258_v11 = vld [vmem:[#allocation8 + $0x30] sm:$0xff]  ;;  %p525_p7 = scmp.lt.s32.totalorder %s353_s25, %s353_s25 }
  0x37   :  { %390 = vmatprep.subr.mxu1 %v554_v0  ;;  %411 = vmatpush3.msra.mxu0 %v259_v10  ;;  %v257_v12 = vld [vmem:[#allocation8 + $0x28] sm:$0xff]  ;;  %v256_v13 = vld [vmem:[#allocation8 + $0x20] sm:$0xff]  ;;  %v255_v14 = vld [vmem:[#allocation8 + $0x18] sm:$0xff] }
  0x38   :  { %391 = vmatpush3.msra.mxu1 %v83_v2  ;;  %412 = vmatprep.subr.mxu0 %v554_v0  ;;  %v363_v15 = vld [vmem:[%s637_s2] ss:$0 sm:$0xff]  ;;  %v254_v20 = vld [vmem:[#allocation8 + $0x10] sm:$0xff]  ;;  %v253_v21 = vld [vmem:[#allocation8 + $0x8] sm:$0xff] }
  0x39   :  { %392 = vmatprep.subr.mxu1 %v554_v0  ;;  %413 = vmatpush3.msra.mxu0 %v258_v11  ;;  %v252_v22 = vld [vmem:[#allocation8] sm:$0xff]  ;;  %v365_v23 = vld [vmem:[%s639_s4] ss:$0 sm:$0xff]  ;;  %s520_s4 = scalar_lea.vmem %s353_s25, 128 }
  0x3a   :  { %393 = vmatpush3.msra.mxu1 %v82_v3  ;;  %414 = vmatprep.subr.mxu0 %v554_v0  ;;  %v367_v28 = vld [vmem:[%s641_s6] ss:$0 sm:$0xff]  ;;  %p521_p6 = scmp.ne.s32.totalorder %s353_s25, %s520_s4  ;;  %p526_p8 = scmp.lt.s32.totalorder %s520_s4, %s520_s4 }
  0x3b   :  { %394 = vmatprep.subr.mxu1 %v554_v0  ;;  %415 = vmatpush3.msra.mxu0 %v257_v12 }
  0x3c   :  { %395 = vmatpush3.msra.mxu1 %v81_v4  ;;  %416 = vmatprep.subr.mxu0 %v554_v0  ;;  %p527_p9 = por %p526_p8, %p525_p7 }
  0x3d   :  { %397 = vmatmul.mubr.msk.f32.vlgmr.msra.gmra.mxu1 %vm92_vm1, %v80_v5  ;;  %399 = vmatprep.subr.mxu1 %v554_v0 }
  0x3e   :  { %400 = vmatpush3.msra.mxu1 %v170_v6  ;;  %407 = vmatprep.mubr.msk.f32.mxu1 %vm555_vm0, %v554_v0  ;;  %p528_p10 = pnand %p527_p9, %p521_p6 }
  0x3f   :  { %401 = vmatprep.subr.mxu1 %v554_v0  ;;  %417 = vmatpush3.msra.mxu0 %v256_v13 }
  0x40   :  { %402 = vmatpush3.msra.mxu1 %v169_v7  ;;  %418 = vmatprep.subr.mxu0 %v554_v0 }
  0x41   :  { %403 = vmatprep.subr.mxu1 %v554_v0  ;;  %419 = vmatpush3.msra.mxu0 %v255_v14 }
  0x42   :  { %404 = vmatpush3.msra.mxu1 %v168_v8  ;;  %420 = vmatprep.subr.mxu0 %v554_v0 }
  0x43   :  { %405 = vmatprep.subr.mxu1 %v554_v0  ;;  %421 = vmatpush3.msra.mxu0 %v254_v20 }
  0x44   :  { %406 = vmatpush3.msra.mxu1 %v167_v9  ;;  %422 = vmatprep.subr.mxu0 %v554_v0 }
  0x45   :  { %423 = vmatpush3.msra.mxu0 %v253_v21 }
  0x46   :  { %424 = vmatprep.subr.mxu0 %v554_v0 }
  0x47   :  { %425 = vmatpush3.msra.mxu0 %v252_v22 }
  0xfd   :  { %v162_v16 = vpop.f32.mrf.mxu1 }
  0xfe   :  { %v163_v17 = vadd.f32 %v363_v15, %v162_v16 }
  0xff   :  { %v398_v18 = vpop.f32.mrf.mxu1 }
 0x100   :  { %v166_v19 = vmax.f32 %v163_v17, 0.0 }
 0x102   :  { %408 = vmatmul.mubr.msk.f32.vlgmr.msra.gmra.mxu1 %vm92_vm1, %v166_v19 }
 0x1c2   :  { %v247_v24 = vpop.f32.mrf.mxu1 }
 0x1c3   :  { %v248_v25 = vadd.f32 %v365_v23, %v247_v24 }
 0x1c4   :  { %v409_v26 = vpop.f32.mrf.mxu1 }
 0x1c5   :  { %v251_v27 = vmax.f32 %v248_v25, 0.0 }
 0x1c7   :  { %427 = vmatmul.mubr.msk.f32.vlgmr.msra.gmra.mxu0 %vm267_vm2, %v251_v27 }
 0x287   :  { %v337_v29 = vpop.f32.mrf.mxu0 }
 0x288   :  { %v338_v30 = vadd.f32 %v367_v28, %v337_v29 }
 0x289   :  { %v428_v31 = vpop.f32.mrf.mxu0 }
 0x28a   :  { %v341_v32 = vmul.f32 0.5, %v338_v30 }
 0x28c   :  { %438 = vtanh.f32 %v341_v32 }
 0x299   :  { %v439_v33 = vpop.eup %438 }
 0x29a   :  { %v343_v34 = vmul.f32 0.5, %v439_v33 }
 0x29c   :  { %v344_v35 = vadd.f32 0.5, %v343_v34 }
 0x29e   :  { %345 = vst [vmem:[#allocation10] sm:$0xff] %v344_v35 }
 0x29f   :  { %531 = shalt.err (!%p528_p10)
}
 0x2a0   :  { %355 = dma.vmem_to_hbm [thread:$0]  %s353_s25, 128, %s642_s7, [#allocation4]  }
 0x2a1   :  { %546 = dma.done.wait [#allocation4], 128  }
 0x2a2   :  { %547 = vsyncadd [#allocation4], 4294967168 }
 0x2a3   :  { %359 = vsyncpa [#allocation3], 1 }
 0x2a4   :  { %360 = vsyncpa [#allocation6], 1 }
 0x2a5   :  { %361 = vsyncpa [#allocation9], 1 }
 0x2a6   :  { %362 = vsyncpa [#allocation4], 1 }

</bundles_post_ra>
